<compile_context>
chip_gen: v7x
topology: tpu7x:2x2x1
jax: 0.10.0
libtpu: 0.0.40
codegen_flags: <defaults>
</compile_context>

<pallas_src>
import math
from functools import partial

import jax
import jax.numpy as jnp
from jax.experimental import pallas as pl
from jax.experimental.pallas import tpu as pltpu


def _round_up(x, m):
    return ((x + m - 1) // m) * m


def _vmem_capacity_bytes():
    try:
        return int(pltpu.get_tpu_info().vmem_capacity_bytes)
    except Exception:
        return 64 * 1024 * 1024   # conservative default (v7x per-TensorCore VMEM)


# ---------------------------------------------------------------------------
# Kernel
# ---------------------------------------------------------------------------
def node_repr_vae_kernel(sigma_ref,                    # SMEM (1,1) f32
                         g_ref, sim_ref, eps_ref,      # VMEM activation tiles
                         wg_ref, ws_ref, b_ref,        # VMEM fused weights / bias
                         out_ref,                      # VMEM packed output tile
                         acc_ref,                      # VMEM f32 accumulator scratch
                         *, matmul_dtype):
    k = pl.program_id(1)                               # Din (reduction) axis, last in grid
    h2p = eps_ref.shape[-1]                            # lane-padded latent width (mult. of 128)
    w2 = ws_ref.shape[-1]                              # 2 * h2p (q-branch columns)

    @pl.when(k == 0)
    def _init():
        acc_ref[...] = jnp.zeros_like(acc_ref)

    g, sim = g_ref[...], sim_ref[...]
    wg, ws = wg_ref[...], ws_ref[...]
    if matmul_dtype is not None:                       # bf16 MXU operands on v6e/v7x
        g, sim = g.astype(matmul_dtype), sim.astype(matmul_dtype)
        wg, ws = wg.astype(matmul_dtype), ws.astype(matmul_dtype)

    # Fused projection, f32 accumulation.  W_sim only feeds the q-branch
    # (mu_q | logstd_q) columns; the p-branch gets no `sim` contribution.
    acc_ref[...] += jnp.dot(g, wg, preferred_element_type=jnp.float32)
    acc_ref[:, :w2] += jnp.dot(sim, ws, preferred_element_type=jnp.float32)

    @pl.when(k == pl.num_programs(1) - 1)
    def _finalize():
        y = acc_ref[...] + b_ref[...].astype(jnp.float32)       # (tile_n, 4*h2p)
        mu_q = y[:, :h2p]
        ls_q = y[:, h2p:2 * h2p]
        # Reparameterization (training mode): z_q = eps * exp(sigma*logstd_q) + mu_q.
        # Tail rows of a partial last block may compute exp() on garbage; they are
        # discarded by the masked output writeback.
        sigma = sigma_ref[0, 0]
        z_q = eps_ref[...].astype(jnp.float32) * jnp.exp(sigma * ls_q) + mu_q
        # Lane-dense stores: both offsets and widths are multiples of 128.
        out_ref[:, :4 * h2p] = y.astype(out_ref.dtype)
        out_ref[:, 4 * h2p:] = z_q.astype(out_ref.dtype)


# ---------------------------------------------------------------------------
# One-time parameter fusion (linear_layer + delta folded in, lane-padded).
# ---------------------------------------------------------------------------
def prepare_fused_params(params, delta, *, dtype=jnp.float32):
    """Fold linear_layer + delta into the four projections (fusion in f32),
    lane-pad each logical H2 slice to its own 128-lane group, and cast only the
    final fused weight tensors to `dtype` (bias stays f32)."""
    hp = jax.lax.Precision.HIGHEST
    f32 = jnp.float32
    WlT, bl = params["w_lin"].astype(f32).T, params["b_lin"].astype(f32)
    WmqT, bmq = params["w_mean_q"].astype(f32).T, params["b_mean_q"].astype(f32)
    WlqT, blq = params["w_logstd_q"].astype(f32).T, params["b_logstd_q"].astype(f32)
    WmpT, bmp = params["w_mean_p"].astype(f32).T, params["b_mean_p"].astype(f32)
    WlpT, blp = params["w_logstd_p"].astype(f32).T, params["b_logstd_p"].astype(f32)

    Din, H2 = WmqT.shape
    H2p = _round_up(H2, 128)

    def pad_cols(w):                      # [Din, H2] -> [Din, H2p]
        return w if H2p == H2 else jnp.pad(w, ((0, 0), (0, H2p - H2)))

    def pad_vec(b):                       # [H2] -> [H2p]
        return b if H2p == H2 else jnp.pad(b, (0, H2p - H2))

    # Column packing: (mu_q | logstd_q | mu_p | logstd_p), each H2p lanes wide.
    w_g = jnp.concatenate([pad_cols(WmqT), pad_cols(WlqT),
                           pad_cols(WmpT), pad_cols(WlpT)], axis=1)          # [Din, 4*H2p]
    # sim reaches only the q-branch (the p-branch half would be all zeros -> dropped).
    w_sim = jnp.concatenate(
        [pad_cols(delta * jnp.dot(WlT, WmqT, precision=hp)),
         pad_cols(delta * jnp.dot(WlT, WlqT, precision=hp))], axis=1)        # [Din, 2*H2p]
    b_fused = jnp.concatenate(
        [pad_vec(bmq + delta * jnp.dot(bl, WmqT, precision=hp)),
         pad_vec(blq + delta * jnp.dot(bl, WlqT, precision=hp)),
         pad_vec(bmp), pad_vec(blp)]).reshape(1, -1)                         # [1, 4*H2p] f32

    return w_g.astype(dtype), w_sim.astype(dtype), b_fused


# ---------------------------------------------------------------------------
# Tile / VMEM planning (per-generation budget via get_tpu_info).
# ---------------------------------------------------------------------------
def _plan_tiles(N, Din, H2p, act_bytes, w_bytes, out_bytes,
                tile_n_cap, single_buffer_weights):
    capacity = _vmem_capacity_bytes()
    budget = int(capacity * 0.75)                    # headroom for compiler temporaries
    n_wbuf = 1 if single_buffer_weights else 2
    sub = {1: 32, 2: 16}.get(act_bytes, 8)           # sublane packing granularity per dtype

    tile_n = min(tile_n_cap, N)
    if tile_n < N:                                   # partial tail blocks need (sub,128) tiling
        tile_n = max(sub, (tile_n // sub) * sub)

    def needed(tn, tk):
        acts = 2 * (2 * tn * tk + tn * H2p) * act_bytes          # g, sim, eps (double-buffered)
        wts = n_wbuf * (6 * tk * H2p + 4 * H2p) * w_bytes        # W_g, W_sim, bias
        outs = 2 * tn * 5 * H2p * out_bytes                      # packed output
        acc = 4 * tn * 4 * H2p                                   # f32 accumulator scratch
        return acts + wts + outs + acc

    # Din (K) tiling: keep the fused weights resident if they fit, otherwise stream
    # 128-aligned K slices that exactly cover Din (v7x 64 MiB VMEM case).
    tk = Din
    if needed(tile_n, tk) > budget and Din % 128 == 0:
        m = Din // 128
        for d in range(m, 0, -1):
            if m % d == 0 and needed(tile_n, 128 * d) <= budget:
                tk = 128 * d
                break
        else:
            tk = 128
    while needed(tile_n, tk) > budget and tile_n > sub:
        tile_n = max(sub, ((tile_n // 2) // sub) * sub)

    vmem_limit = max(int(needed(tile_n, tk) * 1.5), 32 * 1024 * 1024)
    vmem_limit = min(vmem_limit, int(capacity * 0.98))
    return tile_n, tk, vmem_limit


# ---------------------------------------------------------------------------
# Forward wrapper
# ---------------------------------------------------------------------------
def node_repr_vae_forward(w_g, w_sim, b_fused, sigma,
                          train_embedding, most_similar_embedding, eps,
                          *, tile_n=512, out_dtype=jnp.float32,
                          matmul_dtype=None, single_buffer_weights=True):
    N, Din = train_embedding.shape
    H2 = eps.shape[-1]
    H2p = w_g.shape[-1] // 4
    assert w_g.shape == (Din, 4 * H2p) and w_sim.shape == (Din, 2 * H2p)
    assert b_fused.shape == (1, 4 * H2p) and H2 <= H2p

    # Lane-pad the reparameterization noise to the padded latent width (small copy;
    # avoid entirely by sampling eps at width H2p upstream).  Padded lanes -> z_q == 0.
    if H2p != H2:
        eps = jnp.pad(eps, ((0, 0), (0, H2p - H2)))

    act_bytes = jnp.dtype(train_embedding.dtype).itemsize
    w_bytes = jnp.dtype(w_g.dtype).itemsize
    out_bytes = jnp.dtype(out_dtype).itemsize

    tile_n, tk, vmem_limit = _plan_tiles(N, Din, H2p, act_bytes, w_bytes, out_bytes,
                                         tile_n, single_buffer_weights)
    if Din % tk:                       # safety: K tiles must exactly cover Din
        tk = Din
    k_steps = Din // tk
    grid = (pl.cdiv(N, tile_n), k_steps)            # reduction (Din) axis last, rows parallel

    # Single-buffer the resident fused weights / bias (their block index never changes);
    # when Din is streamed (k_steps > 1), keep default double-buffering for DMA overlap.
    wkw = {}
    if single_buffer_weights and k_steps == 1:
        wkw["pipeline_mode"] = pl.Buffered(buffer_count=1)

    sigma_arr = jnp.asarray(sigma, jnp.float32).reshape(1, 1)

    cost = pl.CostEstimate(
        flops=int(2 * N * Din * 6 * H2p + 6 * N * H2p),
        transcendentals=int(N * H2p),
        bytes_accessed=int(act_bytes * N * (2 * Din + H2p)
                           + w_bytes * (Din * 6 * H2p + 4 * H2p)
                           * (1 if k_steps == 1 else pl.cdiv(N, tile_n))
                           + out_bytes * N * 5 * H2p),
    )

    packed = pl.pallas_call(
        partial(node_repr_vae_kernel, matmul_dtype=matmul_dtype),
        out_shape=jax.ShapeDtypeStruct((N, 5 * H2p), out_dtype),
        grid=grid,
        in_specs=[
            pl.BlockSpec(memory_space=pltpu.MemorySpace.SMEM),           # sigma (scalar)
            pl.BlockSpec((tile_n, tk), lambda i, k: (i, k)),             # g rows
            pl.BlockSpec((tile_n, tk), lambda i, k: (i, k)),             # sim rows
            pl.BlockSpec((tile_n, H2p), lambda i, k: (i, 0)),            # eps rows
            pl.BlockSpec((tk, 4 * H2p), lambda i, k: (k, 0), **wkw),     # W_g
            pl.BlockSpec((tk, 2 * H2p), lambda i, k: (k, 0), **wkw),     # W_sim (q-branch only)
            pl.BlockSpec((1, 4 * H2p), lambda i, k: (0, 0), **wkw),      # fused bias
        ],
        out_specs=pl.BlockSpec((tile_n, 5 * H2p), lambda i, k: (i, 0)),
        scratch_shapes=[pltpu.VMEM((tile_n, 4 * H2p), jnp.float32)],
        compiler_params=pltpu.CompilerParams(
            dimension_semantics=("parallel", "arbitrary"),
            vmem_limit_bytes=vmem_limit),
        cost_estimate=cost,
    )(sigma_arr, train_embedding, most_similar_embedding, eps, w_g, w_sim, b_fused)

    mu_q = packed[:, 0 * H2p:0 * H2p + H2]
    ls_q = packed[:, 1 * H2p:1 * H2p + H2]
    mu_p = packed[:, 2 * H2p:2 * H2p + H2]
    ls_p = packed[:, 3 * H2p:3 * H2p + H2]
    z_q = packed[:, 4 * H2p:4 * H2p + H2]
    return z_q, mu_q, ls_q, mu_p, ls_p


# ---------------------------------------------------------------------------
# Test harness
# ---------------------------------------------------------------------------
def _init_linear(kw, kb, in_f, out_f):
    # deterministic PyTorch-style nn.Linear init: U(-1/sqrt(in), 1/sqrt(in))
    bound = 1.0 / math.sqrt(in_f)
    w = jax.random.uniform(kw, (out_f, in_f), jnp.float32, -bound, bound)
    b = jax.random.uniform(kb, (out_f,), jnp.float32, -bound, bound)
    return w, b


if __name__ == "__main__":
    key = jax.random.PRNGKey(0)

    # Small shapes consistent with the module: model_name without 'gat' -> n = 1
    N = 8
    hidden_dim1 = 32
    hidden_dim2 = 32
    n = 1
    Din = hidden_dim1 * n
    delta = 0.5
    sigma = 1.0

    ks = jax.random.split(key, 13)
    params = {}
    params["w_lin"],      params["b_lin"]      = _init_linear(ks[0], ks[1], Din, Din)
    params["w_mean_q"],   params["b_mean_q"]   = _init_linear(ks[2], ks[3], Din, hidden_dim2)
    params["w_logstd_q"], params["b_logstd_q"] = _init_linear(ks[4], ks[5], Din, hidden_dim2)
    params["w_mean_p"],   params["b_mean_p"]   = _init_linear(ks[6], ks[7], Din, hidden_dim2)
    params["w_logstd_p"], params["b_logstd_p"] = _init_linear(ks[8], ks[9], Din, hidden_dim2)

    train_embedding = jax.random.normal(ks[10], (N, Din), jnp.float32)
    most_similar_embedding = jax.random.normal(ks[11], (N, Din), jnp.float32)
    eps = jax.random.normal(ks[12], (N, hidden_dim2), jnp.float32)   # reparam noise

    # Pure-JAX reference (original un-fused formulation, training mode).
    def ref_forward():
        lin = most_similar_embedding @ params["w_lin"].T + params["b_lin"]
        x = train_embedding + delta * lin
        r_mu_q = x @ params["w_mean_q"].T + params["b_mean_q"]
        r_ls_q = x @ params["w_logstd_q"].T + params["b_logstd_q"]
        r_mu_p = train_embedding @ params["w_mean_p"].T + params["b_mean_p"]
        r_ls_p = train_embedding @ params["w_logstd_p"].T + params["b_logstd_p"]
        r_zq = eps * jnp.exp(sigma * r_ls_q) + r_mu_q
        return r_zq, r_mu_q, r_ls_q, r_mu_p, r_ls_p
    ref = ref_forward()

    # --- f32 path (exact-ish vs reference) ---------------------------------
    w_g, w_sim, b_fused = prepare_fused_params(params, delta)
    single_buf = True
    try:
        outs = node_repr_vae_forward(w_g, w_sim, b_fused, sigma,
                                     train_embedding, most_similar_embedding, eps,
                                     single_buffer_weights=True)
    except Exception:
        # Fallback for JAX builds where BlockSpec.pipeline_mode single-buffering
        # is not supported by the Mosaic pallas_call pipeline.
        single_buf = False
        outs = node_repr_vae_forward(w_g, w_sim, b_fused, sigma,
                                     train_embedding, most_similar_embedding, eps,
                                     single_buffer_weights=False)
    outs = jax.block_until_ready(outs)
    for got, want in zip(outs, ref):
        assert got.shape == want.shape, "shape mismatch vs reference (f32 path)"
        assert jnp.allclose(got, want, rtol=2e-3, atol=2e-4), "f32 mismatch vs reference"

    # --- bf16-operand path (v6e/v7x MXU-friendly), bf16 output -------------
    w_g16, w_sim16, b_f16 = prepare_fused_params(params, delta, dtype=jnp.bfloat16)
    outs16 = node_repr_vae_forward(w_g16, w_sim16, b_f16, sigma,
                                   train_embedding, most_similar_embedding, eps,
                                   out_dtype=jnp.bfloat16,
                                   matmul_dtype=jnp.bfloat16,
                                   single_buffer_weights=single_buf)
    outs16 = jax.block_until_ready(outs16)
    for got, want in zip(outs16, ref):
        assert jnp.allclose(got.astype(jnp.float32), want, rtol=5e-2, atol=5e-2), \
            "bf16 mismatch vs reference"

    print("KERNEL_OK")
</pallas_src>

<mosaic_0001>
module attributes {stable_mosaic.version = 11 : i64} {
  func.func @node_repr_vae_kernel(%arg0: i32, %arg1: i32, %arg2: memref<1x1xf32, #tpu.memory_space<smem>>, %arg3: memref<8x32xf32, #tpu.memory_space<vmem>>, %arg4: memref<8x32xf32, #tpu.memory_space<vmem>>, %arg5: memref<8x128xf32, #tpu.memory_space<vmem>>, %arg6: memref<32x512xf32, #tpu.memory_space<vmem>>, %arg7: memref<32x256xf32, #tpu.memory_space<vmem>>, %arg8: memref<1x512xf32, #tpu.memory_space<vmem>>, %arg9: memref<8x640xf32, #tpu.memory_space<vmem>>, %arg10: memref<8x512xf32, #tpu.memory_space<vmem>>) attributes {dimension_semantics = [#tpu.dimension_semantics<parallel>, #tpu.dimension_semantics<arbitrary>], iteration_bounds = array<i64: 1, 1>, scalar_prefetch = 0 : i64, scratch_operands = 1 : i64, tpu.core_type = #tpu.core_type<tc>, window_params = [{transform_indices = @transform_0, window_bounds = array<i64: 1, 1>}, {transform_indices = @transform_1, window_bounds = array<i64: 8, 32>}, {transform_indices = @transform_2, window_bounds = array<i64: 8, 32>}, {transform_indices = @transform_3, window_bounds = array<i64: 8, 128>}, {pipeline_mode = #tpu.pipeline_mode<synchronous>, transform_indices = @transform_4, window_bounds = array<i64: 32, 512>}, {pipeline_mode = #tpu.pipeline_mode<synchronous>, transform_indices = @transform_5, window_bounds = array<i64: 32, 256>}, {pipeline_mode = #tpu.pipeline_mode<synchronous>, transform_indices = @transform_6, window_bounds = array<i64: 1, 512>}, {transform_indices = @transform_7, window_bounds = array<i64: 8, 640>}]} {
    %c0_i32 = arith.constant 0 : i32
    %0 = arith.cmpi eq, %arg1, %c0_i32 : i32
    %1 = arith.extui %0 : i1 to i32
    %c0_i32_0 = arith.constant 0 : i32
    %2 = arith.cmpi ne, %1, %c0_i32_0 : i32
    scf.if %2 {
      %cst_19 = arith.constant 0.000000e+00 : f32
      %18 = vector.broadcast %cst_19 : f32 to vector<8x512xf32>
      %c0_20 = arith.constant 0 : index
      %c0_21 = arith.constant 0 : index
      %19 = vector.load %arg10[%c0_20, %c0_21] : memref<8x512xf32, #tpu.memory_space<vmem>>, vector<8x512xf32>
      tpu.vector_store %arg10[%c0_20, %c0_21], %18 {strides = array<i32>} : memref<8x512xf32, #tpu.memory_space<vmem>>, vector<8x512xf32>,
    } else {
    }
    %c0 = arith.constant 0 : index
    %c0_1 = arith.constant 0 : index
    %3 = vector.load %arg3[%c0, %c0_1] : memref<8x32xf32, #tpu.memory_space<vmem>>, vector<8x32xf32>
    %c0_2 = arith.constant 0 : index
    %c0_3 = arith.constant 0 : index
    %4 = vector.load %arg4[%c0_2, %c0_3] : memref<8x32xf32, #tpu.memory_space<vmem>>, vector<8x32xf32>
    %c0_4 = arith.constant 0 : index
    %c0_5 = arith.constant 0 : index
    %5 = vector.load %arg6[%c0_4, %c0_5] : memref<32x512xf32, #tpu.memory_space<vmem>>, vector<32x512xf32>
    %c0_6 = arith.constant 0 : index
    %c0_7 = arith.constant 0 : index
    %6 = vector.load %arg7[%c0_6, %c0_7] : memref<32x256xf32, #tpu.memory_space<vmem>>, vector<32x256xf32>
    %c0_8 = arith.constant 0 : index
    %c0_9 = arith.constant 0 : index
    %7 = vector.load %arg10[%c0_8, %c0_9] : memref<8x512xf32, #tpu.memory_space<vmem>>, vector<8x512xf32>
    %cst = arith.constant dense<0.000000e+00> : vector<8x512xf32>
    %8 = tpu.matmul %3, %5, %cst {dimension_numbers = #tpu.dot_dimension_numbers<[1], [0], [0], [1], [0, 0, 1, 1], [], []>} : vector<8x32xf32>, vector<32x512xf32>, vector<8x512xf32> -> vector<8x512xf32>
    %9 = arith.addf %7, %8 : vector<8x512xf32>
    %c0_10 = arith.constant 0 : index
    %c0_11 = arith.constant 0 : index
    %10 = vector.load %arg10[%c0_10, %c0_11] : memref<8x512xf32, #tpu.memory_space<vmem>>, vector<8x512xf32>
    tpu.vector_store %arg10[%c0_10, %c0_11], %9 {strides = array<i32>} : memref<8x512xf32, #tpu.memory_space<vmem>>, vector<8x512xf32>,
    %c0_12 = arith.constant 0 : index
    %c0_13 = arith.constant 0 : index
    %11 = vector.load %arg10[%c0_12, %c0_13] : memref<8x512xf32, #tpu.memory_space<vmem>>, vector<8x256xf32>
    %cst_14 = arith.constant dense<0.000000e+00> : vector<8x256xf32>
    %12 = tpu.matmul %4, %6, %cst_14 {dimension_numbers = #tpu.dot_dimension_numbers<[1], [0], [0], [1], [0, 0, 1, 1], [], []>} : vector<8x32xf32>, vector<32x256xf32>, vector<8x256xf32> -> vector<8x256xf32>
    %13 = arith.addf %11, %12 : vector<8x256xf32>
    %c0_15 = arith.constant 0 : index
    %c0_16 = arith.constant 0 : index
    %14 = vector.load %arg10[%c0_15, %c0_16] : memref<8x512xf32, #tpu.memory_space<vmem>>, vector<8x256xf32>
    tpu.vector_store %arg10[%c0_15, %c0_16], %13 {strides = array<i32>} : memref<8x512xf32, #tpu.memory_space<vmem>>, vector<8x256xf32>,
    %c0_i32_17 = arith.constant 0 : i32
    %15 = arith.cmpi eq, %arg1, %c0_i32_17 : i32
    %16 = arith.extui %15 : i1 to i32
    %c0_i32_18 = arith.constant 0 : i32
    %17 = arith.cmpi ne, %16, %c0_i32_18 : i32
    scf.if %17 {
      %c0_19 = arith.constant 0 : index
      %c0_20 = arith.constant 0 : index
      %18 = vector.load %arg10[%c0_19, %c0_20] : memref<8x512xf32, #tpu.memory_space<vmem>>, vector<8x512xf32>
      %c0_21 = arith.constant 0 : index
      %c0_22 = arith.constant 0 : index
      %19 = vector.load %arg8[%c0_21, %c0_22] : memref<1x512xf32, #tpu.memory_space<vmem>>, vector<1x512xf32>
      %20 = vector.broadcast %19 : vector<1x512xf32> to vector<8x512xf32>
      %21 = arith.addf %18, %20 : vector<8x512xf32>
      %22 = vector.extract_strided_slice %21 {offsets = [0, 0], sizes = [8, 128], strides = [1, 1]} : vector<8x512xf32> to vector<8x128xf32>
      %23 = vector.extract_strided_slice %21 {offsets = [0, 128], sizes = [8, 128], strides = [1, 1]} : vector<8x512xf32> to vector<8x128xf32>
      %c0_23 = arith.constant 0 : index
      %c0_24 = arith.constant 0 : index
      %24 = memref.load %arg2[%c0_23, %c0_24] : memref<1x1xf32, #tpu.memory_space<smem>>
      %c0_25 = arith.constant 0 : index
      %c0_26 = arith.constant 0 : index
      %25 = vector.load %arg5[%c0_25, %c0_26] : memref<8x128xf32, #tpu.memory_space<vmem>>, vector<8x128xf32>
      %26 = vector.broadcast %24 : f32 to vector<8x128xf32>
      %27 = arith.mulf %26, %23 : vector<8x128xf32>
      %28 = math.exp %27 : vector<8x128xf32>
      %29 = arith.mulf %25, %28 : vector<8x128xf32>
      %30 = arith.addf %29, %22 : vector<8x128xf32>
      %c0_27 = arith.constant 0 : index
      %c0_28 = arith.constant 0 : index
      %31 = vector.load %arg9[%c0_27, %c0_28] : memref<8x640xf32, #tpu.memory_space<vmem>>, vector<8x512xf32>
      tpu.vector_store %arg9[%c0_27, %c0_28], %21 {strides = array<i32>} : memref<8x640xf32, #tpu.memory_space<vmem>>, vector<8x512xf32>,
      %c0_29 = arith.constant 0 : index
      %c512 = arith.constant 512 : index
      %32 = vector.load %arg9[%c0_29, %c512] : memref<8x640xf32, #tpu.memory_space<vmem>>, vector<8x128xf32>
      tpu.vector_store %arg9[%c0_29, %c512], %30 {strides = array<i32>} : memref<8x640xf32, #tpu.memory_space<vmem>>, vector<8x128xf32>,
    } else {
    }
    return
  }
  func.func @transform_0(%arg0: i32, %arg1: i32) -> (i32, i32) {
    %c0_i32 = arith.constant 0 : i32
    %c0_i32_0 = arith.constant 0 : i32
    %c0_i32_1 = arith.constant 0 : i32
    return %c0_i32, %c0_i32_0 : i32, i32
  }
  func.func @transform_1(%arg0: i32, %arg1: i32) -> (i32, i32) {
    %c0_i32 = arith.constant 0 : i32
    return %arg0, %arg1 : i32, i32
  }
  func.func @transform_2(%arg0: i32, %arg1: i32) -> (i32, i32) {
    %c0_i32 = arith.constant 0 : i32
    return %arg0, %arg1 : i32, i32
  }
  func.func @transform_3(%arg0: i32, %arg1: i32) -> (i32, i32) {
    %c0_i32 = arith.constant 0 : i32
    %c0_i32_0 = arith.constant 0 : i32
    return %arg0, %c0_i32 : i32, i32
  }
  func.func @transform_4(%arg0: i32, %arg1: i32) -> (i32, i32) {
    %c0_i32 = arith.constant 0 : i32
    %c0_i32_0 = arith.constant 0 : i32
    return %arg1, %c0_i32 : i32, i32
  }
  func.func @transform_5(%arg0: i32, %arg1: i32) -> (i32, i32) {
    %c0_i32 = arith.constant 0 : i32
    %c0_i32_0 = arith.constant 0 : i32
    return %arg1, %c0_i32 : i32, i32
  }
  func.func @transform_6(%arg0: i32, %arg1: i32) -> (i32, i32) {
    %c0_i32 = arith.constant 0 : i32
    %c0_i32_0 = arith.constant 0 : i32
    %c0_i32_1 = arith.constant 0 : i32
    return %c0_i32, %c0_i32_0 : i32, i32
  }
  func.func @transform_7(%arg0: i32, %arg1: i32) -> (i32, i32) {
    %c0_i32 = arith.constant 0 : i32
    %c0_i32_0 = arith.constant 0 : i32
    return %arg0, %c0_i32 : i32, i32
  }
}

module attributes {stable_mosaic.version = 11 : i64} {
  func.func @node_repr_vae_kernel(%arg0: i32, %arg1: i32, %arg2: memref<1x1xf32, #tpu.memory_space<smem>>, %arg3: memref<8x32xf32, #tpu.memory_space<vmem>>, %arg4: memref<8x32xf32, #tpu.memory_space<vmem>>, %arg5: memref<8x128xf32, #tpu.memory_space<vmem>>, %arg6: memref<32x512xf32, #tpu.memory_space<vmem>>, %arg7: memref<32x256xf32, #tpu.memory_space<vmem>>, %arg8: memref<1x512xf32, #tpu.memory_space<vmem>>, %arg9: memref<8x640xf32, #tpu.memory_space<vmem>>, %arg10: memref<8x512xf32, #tpu.memory_space<vmem>>) attributes {dimension_semantics = [#tpu.dimension_semantics<parallel>, #tpu.dimension_semantics<arbitrary>], iteration_bounds = array<i64: 1, 1>, scalar_prefetch = 0 : i64, scratch_operands = 1 : i64, tpu.core_type = #tpu.core_type<tc>, window_params = [{transform_indices = @transform_0, window_bounds = array<i64: 1, 1>}, {transform_indices = @transform_1, window_bounds = array<i64: 8, 32>}, {transform_indices = @transform_2, window_bounds = array<i64: 8, 32>}, {transform_indices = @transform_3, window_bounds = array<i64: 8, 128>}, {transform_indices = @transform_4, window_bounds = array<i64: 32, 512>}, {transform_indices = @transform_5, window_bounds = array<i64: 32, 256>}, {pipeline_mode = #tpu.pipeline_mode<synchronous>, transform_indices = @transform_6, window_bounds = array<i64: 1, 512>}, {transform_indices = @transform_7, window_bounds = array<i64: 8, 640>}]} {
    %c0_i32 = arith.constant 0 : i32
    %0 = arith.cmpi eq, %arg1, %c0_i32 : i32
    %1 = arith.extui %0 : i1 to i32
    %c0_i32_0 = arith.constant 0 : i32
    %2 = arith.cmpi ne, %1, %c0_i32_0 : i32
    scf.if %2 {
      %cst_19 = arith.constant 0.000000e+00 : f32
      %18 = vector.broadcast %cst_19 : f32 to vector<8x512xf32>
      %c0_20 = arith.constant 0 : index
      %c0_21 = arith.constant 0 : index
      %19 = vector.load %arg10[%c0_20, %c0_21] : memref<8x512xf32, #tpu.memory_space<vmem>>, vector<8x512xf32>
      tpu.vector_store %arg10[%c0_20, %c0_21], %18 {strides = array<i32>} : memref<8x512xf32, #tpu.memory_space<vmem>>, vector<8x512xf32>,
    } else {
    }
    %c0 = arith.constant 0 : index
    %c0_1 = arith.constant 0 : index
    %3 = vector.load %arg3[%c0, %c0_1] : memref<8x32xf32, #tpu.memory_space<vmem>>, vector<8x32xf32>
    %c0_2 = arith.constant 0 : index
    %c0_3 = arith.constant 0 : index
    %4 = vector.load %arg4[%c0_2, %c0_3] : memref<8x32xf32, #tpu.memory_space<vmem>>, vector<8x32xf32>
    %c0_4 = arith.constant 0 : index
    %c0_5 = arith.constant 0 : index
    %5 = vector.load %arg6[%c0_4, %c0_5] : memref<32x512xf32, #tpu.memory_space<vmem>>, vector<32x512xf32>
    %c0_6 = arith.constant 0 : index
    %c0_7 = arith.constant 0 : index
    %6 = vector.load %arg7[%c0_6, %c0_7] : memref<32x256xf32, #tpu.memory_space<vmem>>, vector<32x256xf32>
    %c0_8 = arith.constant 0 : index
    %c0_9 = arith.constant 0 : index
    %7 = vector.load %arg10[%c0_8, %c0_9] : memref<8x512xf32, #tpu.memory_space<vmem>>, vector<8x512xf32>
    %cst = arith.constant dense<0.000000e+00> : vector<8x512xf32>
    %8 = tpu.matmul %3, %5, %cst {dimension_numbers = #tpu.dot_dimension_numbers<[1], [0], [0], [1], [0, 0, 1, 1], [], []>} : vector<8x32xf32>, vector<32x512xf32>, vector<8x512xf32> -> vector<8x512xf32>
    %9 = arith.addf %7, %8 : vector<8x512xf32>
    %c0_10 = arith.constant 0 : index
    %c0_11 = arith.constant 0 : index
    %10 = vector.load %arg10[%c0_10, %c0_11] : memref<8x512xf32, #tpu.memory_space<vmem>>, vector<8x512xf32>
    tpu.vector_store %arg10[%c0_10, %c0_11], %9 {strides = array<i32>} : memref<8x512xf32, #tpu.memory_space<vmem>>, vector<8x512xf32>,
    %c0_12 = arith.constant 0 : index
    %c0_13 = arith.constant 0 : index
    %11 = vector.load %arg10[%c0_12, %c0_13] : memref<8x512xf32, #tpu.memory_space<vmem>>, vector<8x256xf32>
    %cst_14 = arith.constant dense<0.000000e+00> : vector<8x256xf32>
    %12 = tpu.matmul %4, %6, %cst_14 {dimension_numbers = #tpu.dot_dimension_numbers<[1], [0], [0], [1], [0, 0, 1, 1], [], []>} : vector<8x32xf32>, vector<32x256xf32>, vector<8x256xf32> -> vector<8x256xf32>
    %13 = arith.addf %11, %12 : vector<8x256xf32>
    %c0_15 = arith.constant 0 : index
    %c0_16 = arith.constant 0 : index
    %14 = vector.load %arg10[%c0_15, %c0_16] : memref<8x512xf32, #tpu.memory_space<vmem>>, vector<8x256xf32>
    tpu.vector_store %arg10[%c0_15, %c0_16], %13 {strides = array<i32>} : memref<8x512xf32, #tpu.memory_space<vmem>>, vector<8x256xf32>,
    %c0_i32_17 = arith.constant 0 : i32
    %15 = arith.cmpi eq, %arg1, %c0_i32_17 : i32
    %16 = arith.extui %15 : i1 to i32
    %c0_i32_18 = arith.constant 0 : i32
    %17 = arith.cmpi ne, %16, %c0_i32_18 : i32
    scf.if %17 {
      %c0_19 = arith.constant 0 : index
      %c0_20 = arith.constant 0 : index
      %18 = vector.load %arg10[%c0_19, %c0_20] : memref<8x512xf32, #tpu.memory_space<vmem>>, vector<8x512xf32>
      %c0_21 = arith.constant 0 : index
      %c0_22 = arith.constant 0 : index
      %19 = vector.load %arg8[%c0_21, %c0_22] : memref<1x512xf32, #tpu.memory_space<vmem>>, vector<1x512xf32>
      %20 = vector.broadcast %19 : vector<1x512xf32> to vector<8x512xf32>
      %21 = arith.addf %18, %20 : vector<8x512xf32>
      %22 = vector.extract_strided_slice %21 {offsets = [0, 0], sizes = [8, 128], strides = [1, 1]} : vector<8x512xf32> to vector<8x128xf32>
      %23 = vector.extract_strided_slice %21 {offsets = [0, 128], sizes = [8, 128], strides = [1, 1]} : vector<8x512xf32> to vector<8x128xf32>
      %c0_23 = arith.constant 0 : index
      %c0_24 = arith.constant 0 : index
      %24 = memref.load %arg2[%c0_23, %c0_24] : memref<1x1xf32, #tpu.memory_space<smem>>
      %c0_25 = arith.constant 0 : index
      %c0_26 = arith.constant 0 : index
      %25 = vector.load %arg5[%c0_25, %c0_26] : memref<8x128xf32, #tpu.memory_space<vmem>>, vector<8x128xf32>
      %26 = vector.broadcast %24 : f32 to vector<8x128xf32>
      %27 = arith.mulf %26, %23 : vector<8x128xf32>
      %28 = math.exp %27 : vector<8x128xf32>
      %29 = arith.mulf %25, %28 : vector<8x128xf32>
      %30 = arith.addf %29, %22 : vector<8x128xf32>
      %c0_27 = arith.constant 0 : index
      %c0_28 = arith.constant 0 : index
      %31 = vector.load %arg9[%c0_27, %c0_28] : memref<8x640xf32, #tpu.memory_space<vmem>>, vector<8x512xf32>
      tpu.vector_store %arg9[%c0_27, %c0_28], %21 {strides = array<i32>} : memref<8x640xf32, #tpu.memory_space<vmem>>, vector<8x512xf32>,
      %c0_29 = arith.constant 0 : index
      %c512 = arith.constant 512 : index
      %32 = vector.load %arg9[%c0_29, %c512] : memref<8x640xf32, #tpu.memory_space<vmem>>, vector<8x128xf32>
      tpu.vector_store %arg9[%c0_29, %c512], %30 {strides = array<i32>} : memref<8x640xf32, #tpu.memory_space<vmem>>, vector<8x128xf32>,
    } else {
    }
    return
  }
  func.func @transform_0(%arg0: i32, %arg1: i32) -> (i32, i32) {
    %c0_i32 = arith.constant 0 : i32
    %c0_i32_0 = arith.constant 0 : i32
    %c0_i32_1 = arith.constant 0 : i32
    return %c0_i32, %c0_i32_0 : i32, i32
  }
  func.func @transform_1(%arg0: i32, %arg1: i32) -> (i32, i32) {
    %c0_i32 = arith.constant 0 : i32
    return %arg0, %arg1 : i32, i32
  }
  func.func @transform_2(%arg0: i32, %arg1: i32) -> (i32, i32) {
    %c0_i32 = arith.constant 0 : i32
    return %arg0, %arg1 : i32, i32
  }
  func.func @transform_3(%arg0: i32, %arg1: i32) -> (i32, i32) {
    %c0_i32 = arith.constant 0 : i32
    %c0_i32_0 = arith.constant 0 : i32
    return %arg0, %c0_i32 : i32, i32
  }
  func.func @transform_4(%arg0: i32, %arg1: i32) -> (i32, i32) {
    %c0_i32 = arith.constant 0 : i32
    %c0_i32_0 = arith.constant 0 : i32
    return %arg1, %c0_i32 : i32, i32
  }
  func.func @transform_5(%arg0: i32, %arg1: i32) -> (i32, i32) {
    %c0_i32 = arith.constant 0 : i32
    %c0_i32_0 = arith.constant 0 : i32
    return %arg1, %c0_i32 : i32, i32
  }
  func.func @transform_6(%arg0: i32, %arg1: i32) -> (i32, i32) {
    %c0_i32 = arith.constant 0 : i32
    %c0_i32_0 = arith.constant 0 : i32
    %c0_i32_1 = arith.constant 0 : i32
    return %c0_i32, %c0_i32_0 : i32, i32
  }
  func.func @transform_7(%arg0: i32, %arg1: i32) -> (i32, i32) {
    %c0_i32 = arith.constant 0 : i32
    %c0_i32_0 = arith.constant 0 : i32
    return %arg0, %c0_i32 : i32, i32
  }
}

</mosaic_0001>

<bundles_post_ra>
// kernel: tpu_custom_call.1
= control target key start
LH: loop header
LB: loop body
LE: loop exit
PB: predicated region body
PF: predicated region fallthrough
CT: control target
= control target key end

     0   :  { %13 = vsyncpa [#allocation5], 0  ;;  %s695_s0 = inlined_call_operand.<no memory space> [shape: f32[1,1], index: 0, kind: input, shape index: {}]   ;;  %s696_s1 = inlined_call_operand.hbm [shape: f32[8,32], index: 1, kind: input, shape index: {}]   ;;  %s697_s2 = inlined_call_operand.hbm [shape: f32[8,32], index: 2, kind: input, shape index: {}]   ;;  %s698_s3 = inlined_call_operand.vmem [shape: f32[8,128], index: 3, kind: input, shape index: {}]   ;;  %s699_s4 = inlined_call_operand.hbm [shape: f32[32,512], index: 4, kind: input, shape index: {}]   ;;  %s700_s5 = inlined_call_operand.hbm [shape: f32[32,256], index: 5, kind: input, shape index: {}]   ;;  %s701_s6 = inlined_call_operand.vmem [shape: f32[1,512], index: 6, kind: input, shape index: {}]   ;;  %s702_s7 = inlined_call_operand.hbm [shape: f32[8,640], index: 7, kind: output, shape index: {}]  }
   0x1   :  { %14 = vsyncpa [#allocation8], 0 }
   0x2   :  { %15 = vsyncpa [#allocation11], 0 }
   0x3   :  { %16 = vsyncpa [#allocation6], 0  ;;  %s573_s24 = smov [#allocation7]   ;;  %s574_s26 = smov [#allocation4]  }
   0x4   :  { %s35_s25 = sshll.u32 %s573_s24, 4  ;;  %s25_s27 = sshll.u32 %s574_s26, 4  ;;  %s36_s25 = int_to_ptr.vmem [resolvable:$true] %s35_s25  ;;  %s26_s27 = int_to_ptr.vmem [resolvable:$true] %s25_s27 }
   0x5   :  { %s455_s30 = scalar_lea.hbm %s697_s2, 128 }
   0x6   :  { %p456_p0 = scmp.ne.s32.totalorder %s697_s2, %s455_s30  ;;  %p459_p1 = scmp.lt.u32.totalorder %s455_s30, %s697_s2 }
   0x8   :  { %p461_p2 = pnand %p459_p1, %p456_p0 }
   0xa   :  { %464 = shalt.err (!%p461_p2)
}
   0xb   :  { %s465_s12 = scalar_lea.vmem %s36_s25, 128  ;;  %p470_p4 = scmp.lt.s32.totalorder %s36_s25, %s36_s25 }
   0xc   :  { %p466_p3 = scmp.ne.s32.totalorder %s36_s25, %s465_s12  ;;  %p471_p5 = scmp.lt.s32.totalorder %s465_s12, %s465_s12 }
   0xe   :  { %p472_p6 = por %p471_p5, %p470_p4 }
  0x10   :  { %p473_p7 = pnand %p472_p6, %p466_p3 }
  0x12   :  { %476 = shalt.err (!%p473_p7)
}
  0x13   :  { %38 = dma.hbm_to_vmem [thread:$0]  %s697_s2, 128, %s36_s25, [#allocation8]  }
  0x14   :  { %s477_s17 = scalar_lea.hbm %s696_s1, 128 }
  0x15   :  { %p478_p8 = scmp.ne.s32.totalorder %s696_s1, %s477_s17  ;;  %p481_p9 = scmp.lt.u32.totalorder %s477_s17, %s696_s1 }
  0x17   :  { %p483_p10 = pnand %p481_p9, %p478_p8 }
  0x19   :  { %486 = shalt.err (!%p483_p10)
}
  0x1a   :  { %s487_s22 = scalar_lea.vmem %s26_s27, 128  ;;  %p492_p12 = scmp.lt.s32.totalorder %s26_s27, %s26_s27 }
  0x1b   :  { %p488_p11 = scmp.ne.s32.totalorder %s26_s27, %s487_s22  ;;  %p493_p13 = scmp.lt.s32.totalorder %s487_s22, %s487_s22 }
  0x1d   :  { %p494_p0 = por %p493_p13, %p492_p12 }
  0x1f   :  { %p495_p1 = pnand %p494_p0, %p488_p11 }
  0x21   :  { %498 = shalt.err (!%p495_p1)
}
  0x22   :  { %28 = dma.hbm_to_vmem [thread:$0]  %s696_s1, 128, %s26_s27, [#allocation5]  }
  0x23   :  { %s575_s24 = smov [#allocation9]   ;;  %s499_s29 = scalar_lea.hbm %s699_s4, 2048 }
  0x24   :  { %s46_s25 = sshll.u32 %s575_s24, 4  ;;  %p500_p2 = scmp.ne.s32.totalorder %s699_s4, %s499_s29  ;;  %s47_s25 = int_to_ptr.vmem [resolvable:$true] %s46_s25 }
  0x25   :  { %p503_p3 = scmp.lt.u32.totalorder %s499_s29, %s699_s4 }
  0x27   :  { %p505_p4 = pnand %p503_p3, %p500_p2 }
  0x29   :  { %508 = shalt.err (!%p505_p4)
}
  0x2a   :  { %s509_s11 = scalar_lea.vmem %s47_s25, 2048  ;;  %p514_p6 = scmp.lt.s32.totalorder %s47_s25, %s47_s25 }
  0x2b   :  { %p510_p5 = scmp.ne.s32.totalorder %s47_s25, %s509_s11  ;;  %p515_p7 = scmp.lt.s32.totalorder %s509_s11, %s509_s11 }
  0x2d   :  { %p516_p8 = por %p515_p7, %p514_p6 }
  0x2f   :  { %p517_p9 = pnand %p516_p8, %p510_p5 }
  0x31   :  { %520 = shalt.err (!%p517_p9)
}
  0x32   :  { %s576_s1 = smov 512   ;;  %s577_s27 = smov 32  }
  0x33   :  { %52 = dma.hbm_to_vmem [thread:$0]  %s699_s4, 2048, %s47_s25, [#allocation8], %s576_s1, %s576_s1, %s577_s27  }
  0x34   :  { %s578_s14 = smov [#allocation10]   ;;  %s521_s18 = scalar_lea.hbm %s700_s5, 1024 }
  0x35   :  { %s58_s15 = sshll.u32 %s578_s14, 4  ;;  %p522_p10 = scmp.ne.s32.totalorder %s700_s5, %s521_s18  ;;  %s59_s15 = int_to_ptr.vmem [resolvable:$true] %s58_s15 }
  0x36   :  { %p525_p11 = scmp.lt.u32.totalorder %s521_s18, %s700_s5 }
  0x38   :  { %p527_p12 = pnand %p525_p11, %p522_p10 }
  0x3a   :  { %530 = shalt.err (!%p527_p12)
}
  0x3b   :  { %s531_s2 = scalar_lea.vmem %s59_s15, 1024  ;;  %p536_p0 = scmp.lt.s32.totalorder %s59_s15, %s59_s15 }
  0x3c   :  { %p532_p13 = scmp.ne.s32.totalorder %s59_s15, %s531_s2  ;;  %p537_p1 = scmp.lt.s32.totalorder %s531_s2, %s531_s2 }
  0x3e   :  { %p538_p2 = por %p537_p1, %p536_p0 }
  0x40   :  { %p539_p3 = pnand %p538_p2, %p532_p13 }
  0x42   :  { %542 = shalt.err (!%p539_p3)
}
  0x43   :  { %s579_s4 = smov 256   ;;  %s580_s23 = smov 16  }
  0x44   :  { %64 = dma.hbm_to_vmem [thread:$0]  %s700_s5, 1024, %s59_s15, [#allocation11], %s579_s4, %s579_s4, %s580_s23  }
  0x45   :  { %565 = dma.done.wait [#allocation5], 128  }
  0x46   :  { %566 = vsyncadd [#allocation5], 4294967168 }
  0x47   :  { %567 = dma.done.wait [#allocation8], 2176  }
  0x48   :  { %568 = vsyncadd [#allocation8], 4294965120 }
  0x49   :  { %569 = dma.done.wait [#allocation11], 1024  }
  0x4a   :  { %570 = vsyncadd [#allocation11], 4294966272  ;;  %v581_v0 = vmov 0.0   ;;  %v90_v1 = vld [vmem:[#allocation9 + $0x8] sm:$0xff]  ;;  %v89_v3 = vld [vmem:[#allocation9] sm:$0xff]  ;;  %vm117_vm0 = vcmask 261120   ;;  %v360_v39 = vlaneseq  ;;  %v386_v57 = vstv %s695_s0 }
  0x4b   :  { %185 = vmatprep.mubr.f32.mxu0 %v581_v0  ;;  %256 = vmatprep.mubr.f32.mxu1 %v581_v0  ;;  %v94_v2 = vld [vmem:[#allocation9 + $0x28] sm:$0xff]  ;;  %v93_v5 = vld [vmem:[#allocation9 + $0x20] sm:$0xff]  ;;  %v108_v13 = vld [vmem:[#allocation10 + $0x18] sm:$0xff]  ;;  %s582_s8 = smov [#allocation12]  }
  0x4c   :  { %v417_v4 = vpack.c.bf16 %v94_v2, %v90_v1  ;;  %v98_v6 = vld [vmem:[#allocation9 + $0x48] sm:$0xff]  ;;  %v419_v8 = vpack.c.bf16 %v93_v5, %v89_v3  ;;  %v97_v10 = vld [vmem:[#allocation9 + $0x40] sm:$0xff]  ;;  %v107_v17 = vld [vmem:[#allocation10 + $0x10] sm:$0xff]  ;;  %v361_v40 = vshrl.u32 %v360_v39, 7  ;;  %s403_s9 = sshll.u32 %s582_s8, 4  ;;  %s404_s9 = int_to_ptr.vmem [resolvable:$true] %s403_s9 }
  0x4d   :  { %v102_v7 = vld [vmem:[#allocation9 + $0x68] sm:$0xff]  ;;  %v101_v11 = vld [vmem:[#allocation9 + $0x60] sm:$0xff]  ;;  %v112_v19 = vld [vmem:[#allocation10 + $0x38] sm:$0xff]  ;;  %s543_s0 = scalar_lea.vmem %s404_s9, 640  ;;  %p548_p5 = scmp.lt.s32.totalorder %s404_s9, %s404_s9 }
  0x4e   :  { %v421_v9 = vpack.c.bf16 %v102_v7, %v98_v6  ;;  %418 = vmatprep.subr.bf16.mxu0 %v417_v4  ;;  %v106_v12 = vld [vmem:[#allocation10 + $0x8] sm:$0xff]  ;;  %v423_v14 = vpack.c.bf16 %v101_v11, %v97_v10  ;;  %v105_v15 = vld [vmem:[#allocation10] sm:$0xff]  ;;  %v92_v20 = vld [vmem:[#allocation9 + $0x18] sm:$0xff]  ;;  %v370_v41 = vsub.s32 2, %v361_v40  ;;  %v374_v42 = vsub.s32 3, %v361_v40  ;;  %p544_p4 = scmp.ne.s32.totalorder %s404_s9, %s543_s0  ;;  %p549_p6 = scmp.lt.s32.totalorder %s543_s0, %s543_s0 }
  0x4f   :  { %420 = vmatpush1.bf16.msra.mxu0 %v419_v8  ;;  %v433_v16 = vpack.c.bf16 %v108_v13, %v106_v12  ;;  %v110_v18 = vld [vmem:[#allocation10 + $0x28] sm:$0xff]  ;;  %v96_v21 = vld [vmem:[#allocation9 + $0x38] sm:$0xff]  ;;  %v91_v22 = vld [vmem:[#allocation9 + $0x10] sm:$0xff]  ;;  %v435_v28 = vpack.c.bf16 %v107_v17, %v105_v15  ;;  %v362_v43 = vsub.s32 0, %v361_v40  ;;  %v366_v45 = vsub.s32 1, %v361_v40 }
  0x50   :  { %422 = vmatprep.subr.bf16.mxu0 %v421_v9  ;;  %v425_v23 = vpack.c.bf16 %v96_v21, %v92_v20  ;;  %v95_v24 = vld [vmem:[#allocation9 + $0x30] sm:$0xff]  ;;  %v100_v25 = vld [vmem:[#allocation9 + $0x58] sm:$0xff]  ;;  %v437_v33 = vpack.c.bf16 %v112_v19, %v110_v18  ;;  %v109_v34 = vld [vmem:[#allocation10 + $0x20] sm:$0xff]  ;;  %p550_p7 = por %p549_p6, %p548_p5 }
  0x51   :  { %v104_v26 = vld [vmem:[#allocation9 + $0x78] sm:$0xff]  ;;  %v87_v27 = vld [vmem:[#allocation4] sm:$0xff]  ;;  %v427_v29 = vpack.c.bf16 %v95_v24, %v91_v22 }
  0x52   :  { %v429_v30 = vpack.c.bf16 %v104_v26, %v100_v25  ;;  %v99_v31 = vld [vmem:[#allocation9 + $0x50] sm:$0xff]  ;;  %426 = vmatprep.subr.bf16.mxu1 %v425_v23  ;;  %v88_v38 = vld [vmem:[#allocation7] sm:$0xff]  ;;  %p551_p8 = pnand %p550_p7, %p544_p4 }
  0x53   :  { %424 = vmatpush1.bf16.msra.mxu0 %v423_v14  ;;  %v103_v32 = vld [vmem:[#allocation9 + $0x70] sm:$0xff]  ;;  %428 = vmatpush1.bf16.msra.mxu1 %v427_v29 }
  0x54   :  { %434 = vmatprep.subr.bf16.mxu0 %v433_v16  ;;  %v111_v35 = vld [vmem:[#allocation10 + $0x30] sm:$0xff]  ;;  %v431_v36 = vpack.c.bf16 %v103_v32, %v99_v31  ;;  %430 = vmatprep.subr.bf16.mxu1 %v429_v30 }
  0x55   :  { %v439_v37 = vpack.c.bf16 %v111_v35, %v109_v34  ;;  %v358_v44 = vld [vmem:[%s701_s6] sm:$0xf] }
  0x56   :  { %414 = vmatmul.mubr.msk.f32.vlgmr.msra.gmra.mrb[0].mxu0 %vm117_vm0, %v87_v27  ;;  %v371_v46 = vrot.slane %v358_v44, %v370_v41  ;;  %v375_v47 = vrot.slane %v358_v44, %v374_v42  ;;  %v363_v48 = vrot.slane %v358_v44, %v362_v43  ;;  %v367_v49 = vrot.slane %v358_v44, %v366_v45  ;;  %v385_v61 = vld [vmem:[%s698_s3] sm:$0xff] }
  0x57   :  { %436 = vmatpush1.bf16.msra.mxu0 %v435_v28  ;;  %340 = vmatprep.mubr.f32.mxu0 %v581_v0 }
  0x58   :  { %438 = vmatprep.subr.bf16.mxu0 %v437_v33  ;;  %432 = vmatpush1.bf16.msra.mxu1 %v431_v36 }
  0x5b   :  { %440 = vmatpush1.bf16.msra.mxu0 %v439_v37  ;;  %415 = vmatmul.mubr.msk.f32.vlgmr.msra.gmra.mrb[0].mxu1 %vm117_vm0, %v87_v27 }
  0x5e   :  { %416 = vmatmul.mubr.msk.f32.vlgmr.msra.gmra.mrb[0].mxu0 %vm117_vm0, %v88_v38 }
 0x12e   :  { %v258_v50 = vpop.f32.mrb[0].mxu1 }
 0x12f   :  { %v382_v51 = vadd.f32 %v371_v46, %v258_v50  ;;  %v260_v52 = vpop.f32.mrb[1].mxu1 }
 0x130   :  { %v383_v54 = vadd.f32 %v375_v47, %v260_v52 }
 0x131   :  { %v342_v53 = vpop.f32.mrb[0].mxu0  ;;  %394 = vst [vmem:[#allocation12 + $0x10] sm:$0xff] %v382_v51 }
 0x132   :  { %v380_v55 = vadd.f32 %v363_v48, %v342_v53  ;;  %v344_v56 = vpop.f32.mrb[1].mxu0  ;;  %395 = vst [vmem:[#allocation12 + $0x18] sm:$0xff] %v383_v54 }
 0x133   :  { %v381_v58 = vadd.f32 %v367_v49, %v344_v56 }
 0x134   :  { %392 = vst [vmem:[#allocation12] sm:$0xff] %v380_v55 }
 0x135   :  { %v387_v59 = vmul.f32 %v386_v57, %v381_v58  ;;  %393 = vst [vmem:[#allocation12 + $0x8] sm:$0xff] %v381_v58 }
 0x137   :  { %v388_v60 = vmul.f32 1.442695, %v387_v59 }
 0x139   :  { %453 = vpow2.f32 %v388_v60 }
 0x143   :  { %v454_v62 = vpop.eup %453 }
 0x144   :  { %v390_v63 = vmul.f32 %v454_v62, %v385_v61 }
 0x146   :  { %v391_v0 = vadd.f32 %v390_v63, %v380_v55 }
 0x148   :  { %396 = vst [vmem:[#allocation12 + $0x20] sm:$0xff] %v391_v0 }
 0x149   :  { %554 = shalt.err (!%p551_p8)
}
 0x14a   :  { %s555_s1 = scalar_lea.hbm %s702_s7, 640 }
 0x14b   :  { %p556_p9 = scmp.ne.s32.totalorder %s702_s7, %s555_s1  ;;  %p559_p10 = scmp.lt.u32.totalorder %s555_s1, %s702_s7 }
 0x14d   :  { %p561_p11 = pnand %p559_p10, %p556_p9 }
 0x14f   :  { %564 = shalt.err (!%p561_p11)
}
 0x150   :  { %406 = dma.vmem_to_hbm [thread:$0]  %s404_s9, 640, %s702_s7, [#allocation6]  }
 0x151   :  { %571 = dma.done.wait [#allocation6], 640  }
 0x152   :  { %572 = vsyncadd [#allocation6], 4294966656 }
 0x153   :  { %410 = vsyncpa [#allocation5], 1 }
 0x154   :  { %411 = vsyncpa [#allocation8], 1 }
 0x155   :  { %412 = vsyncpa [#allocation11], 1 }
 0x156   :  { %413 = vsyncpa [#allocation6], 1 }

// kernel: tpu_custom_call.1
= control target key start
LH: loop header
LB: loop body
LE: loop exit
PB: predicated region body
PF: predicated region fallthrough
CT: control target
= control target key end

     0   :  { %13 = vsyncpa [#allocation5], 0  ;;  %s695_s0 = inlined_call_operand.<no memory space> [shape: f32[1,1], index: 0, kind: input, shape index: {}]   ;;  %s696_s1 = inlined_call_operand.hbm [shape: f32[8,32], index: 1, kind: input, shape index: {}]   ;;  %s697_s2 = inlined_call_operand.hbm [shape: f32[8,32], index: 2, kind: input, shape index: {}]   ;;  %s698_s3 = inlined_call_operand.vmem [shape: f32[8,128], index: 3, kind: input, shape index: {}]   ;;  %s699_s4 = inlined_call_operand.hbm [shape: f32[32,512], index: 4, kind: input, shape index: {}]   ;;  %s700_s5 = inlined_call_operand.hbm [shape: f32[32,256], index: 5, kind: input, shape index: {}]   ;;  %s701_s6 = inlined_call_operand.vmem [shape: f32[1,512], index: 6, kind: input, shape index: {}]   ;;  %s702_s7 = inlined_call_operand.hbm [shape: f32[8,640], index: 7, kind: output, shape index: {}]  }
   0x1   :  { %14 = vsyncpa [#allocation8], 0 }
   0x2   :  { %15 = vsyncpa [#allocation11], 0 }
   0x3   :  { %16 = vsyncpa [#allocation6], 0  ;;  %s573_s24 = smov [#allocation7]   ;;  %s574_s26 = smov [#allocation4]  }
   0x4   :  { %s35_s25 = sshll.u32 %s573_s24, 4  ;;  %s25_s27 = sshll.u32 %s574_s26, 4  ;;  %s36_s25 = int_to_ptr.vmem [resolvable:$true] %s35_s25  ;;  %s26_s27 = int_to_ptr.vmem [resolvable:$true] %s25_s27 }
   0x5   :  { %s455_s30 = scalar_lea.hbm %s697_s2, 128 }
   0x6   :  { %p456_p0 = scmp.ne.s32.totalorder %s697_s2, %s455_s30  ;;  %p459_p1 = scmp.lt.u32.totalorder %s455_s30, %s697_s2 }
   0x8   :  { %p461_p2 = pnand %p459_p1, %p456_p0 }
   0xa   :  { %464 = shalt.err (!%p461_p2)
}
   0xb   :  { %s465_s12 = scalar_lea.vmem %s36_s25, 128  ;;  %p470_p4 = scmp.lt.s32.totalorder %s36_s25, %s36_s25 }
   0xc   :  { %p466_p3 = scmp.ne.s32.totalorder %s36_s25, %s465_s12  ;;  %p471_p5 = scmp.lt.s32.totalorder %s465_s12, %s465_s12 }
   0xe   :  { %p472_p6 = por %p471_p5, %p470_p4 }
  0x10   :  { %p473_p7 = pnand %p472_p6, %p466_p3 }
  0x12   :  { %476 = shalt.err (!%p473_p7)
}
  0x13   :  { %38 = dma.hbm_to_vmem [thread:$0]  %s697_s2, 128, %s36_s25, [#allocation8]  }
  0x14   :  { %s477_s17 = scalar_lea.hbm %s696_s1, 128 }
  0x15   :  { %p478_p8 = scmp.ne.s32.totalorder %s696_s1, %s477_s17  ;;  %p481_p9 = scmp.lt.u32.totalorder %s477_s17, %s696_s1 }
  0x17   :  { %p483_p10 = pnand %p481_p9, %p478_p8 }
  0x19   :  { %486 = shalt.err (!%p483_p10)
}
  0x1a   :  { %s487_s22 = scalar_lea.vmem %s26_s27, 128  ;;  %p492_p12 = scmp.lt.s32.totalorder %s26_s27, %s26_s27 }
  0x1b   :  { %p488_p11 = scmp.ne.s32.totalorder %s26_s27, %s487_s22  ;;  %p493_p13 = scmp.lt.s32.totalorder %s487_s22, %s487_s22 }
  0x1d   :  { %p494_p0 = por %p493_p13, %p492_p12 }
  0x1f   :  { %p495_p1 = pnand %p494_p0, %p488_p11 }
  0x21   :  { %498 = shalt.err (!%p495_p1)
}
  0x22   :  { %28 = dma.hbm_to_vmem [thread:$0]  %s696_s1, 128, %s26_s27, [#allocation5]  }
  0x23   :  { %s575_s24 = smov [#allocation9]   ;;  %s499_s29 = scalar_lea.hbm %s699_s4, 2048 }
  0x24   :  { %s46_s25 = sshll.u32 %s575_s24, 4  ;;  %p500_p2 = scmp.ne.s32.totalorder %s699_s4, %s499_s29  ;;  %s47_s25 = int_to_ptr.vmem [resolvable:$true] %s46_s25 }
  0x25   :  { %p503_p3 = scmp.lt.u32.totalorder %s499_s29, %s699_s4 }
  0x27   :  { %p505_p4 = pnand %p503_p3, %p500_p2 }
  0x29   :  { %508 = shalt.err (!%p505_p4)
}
  0x2a   :  { %s509_s11 = scalar_lea.vmem %s47_s25, 2048  ;;  %p514_p6 = scmp.lt.s32.totalorder %s47_s25, %s47_s25 }
  0x2b   :  { %p510_p5 = scmp.ne.s32.totalorder %s47_s25, %s509_s11  ;;  %p515_p7 = scmp.lt.s32.totalorder %s509_s11, %s509_s11 }
  0x2d   :  { %p516_p8 = por %p515_p7, %p514_p6 }
  0x2f   :  { %p517_p9 = pnand %p516_p8, %p510_p5 }
  0x31   :  { %520 = shalt.err (!%p517_p9)
}
  0x32   :  { %s576_s1 = smov 512   ;;  %s577_s27 = smov 32  }
  0x33   :  { %52 = dma.hbm_to_vmem [thread:$0]  %s699_s4, 2048, %s47_s25, [#allocation8], %s576_s1, %s576_s1, %s577_s27  }
  0x34   :  { %s578_s14 = smov [#allocation10]   ;;  %s521_s18 = scalar_lea.hbm %s700_s5, 1024 }
  0x35   :  { %s58_s15 = sshll.u32 %s578_s14, 4  ;;  %p522_p10 = scmp.ne.s32.totalorder %s700_s5, %s521_s18  ;;  %s59_s15 = int_to_ptr.vmem [resolvable:$true] %s58_s15 }
  0x36   :  { %p525_p11 = scmp.lt.u32.totalorder %s521_s18, %s700_s5 }
  0x38   :  { %p527_p12 = pnand %p525_p11, %p522_p10 }
  0x3a   :  { %530 = shalt.err (!%p527_p12)
}
  0x3b   :  { %s531_s2 = scalar_lea.vmem %s59_s15, 1024  ;;  %p536_p0 = scmp.lt.s32.totalorder %s59_s15, %s59_s15 }
  0x3c   :  { %p532_p13 = scmp.ne.s32.totalorder %s59_s15, %s531_s2  ;;  %p537_p1 = scmp.lt.s32.totalorder %s531_s2, %s531_s2 }
  0x3e   :  { %p538_p2 = por %p537_p1, %p536_p0 }
  0x40   :  { %p539_p3 = pnand %p538_p2, %p532_p13 }
  0x42   :  { %542 = shalt.err (!%p539_p3)
}
  0x43   :  { %s579_s4 = smov 256   ;;  %s580_s23 = smov 16  }
  0x44   :  { %64 = dma.hbm_to_vmem [thread:$0]  %s700_s5, 1024, %s59_s15, [#allocation11], %s579_s4, %s579_s4, %s580_s23  }
  0x45   :  { %565 = dma.done.wait [#allocation5], 128  }
  0x46   :  { %566 = vsyncadd [#allocation5], 4294967168 }
  0x47   :  { %567 = dma.done.wait [#allocation8], 2176  }
  0x48   :  { %568 = vsyncadd [#allocation8], 4294965120 }
  0x49   :  { %569 = dma.done.wait [#allocation11], 1024  }
  0x4a   :  { %570 = vsyncadd [#allocation11], 4294966272  ;;  %v581_v0 = vmov 0.0   ;;  %v90_v1 = vld [vmem:[#allocation9 + $0x8] sm:$0xff]  ;;  %v89_v3 = vld [vmem:[#allocation9] sm:$0xff]  ;;  %vm117_vm0 = vcmask 261120   ;;  %v360_v39 = vlaneseq  ;;  %v386_v57 = vstv %s695_s0 }
  0x4b   :  { %185 = vmatprep.mubr.f32.mxu0 %v581_v0  ;;  %256 = vmatprep.mubr.f32.mxu1 %v581_v0  ;;  %v94_v2 = vld [vmem:[#allocation9 + $0x28] sm:$0xff]  ;;  %v93_v5 = vld [vmem:[#allocation9 + $0x20] sm:$0xff]  ;;  %v108_v13 = vld [vmem:[#allocation10 + $0x18] sm:$0xff]  ;;  %s582_s8 = smov [#allocation12]  }
  0x4c   :  { %v417_v4 = vpack.c.bf16 %v94_v2, %v90_v1  ;;  %v98_v6 = vld [vmem:[#allocation9 + $0x48] sm:$0xff]  ;;  %v419_v8 = vpack.c.bf16 %v93_v5, %v89_v3  ;;  %v97_v10 = vld [vmem:[#allocation9 + $0x40] sm:$0xff]  ;;  %v107_v17 = vld [vmem:[#allocation10 + $0x10] sm:$0xff]  ;;  %v361_v40 = vshrl.u32 %v360_v39, 7  ;;  %s403_s9 = sshll.u32 %s582_s8, 4  ;;  %s404_s9 = int_to_ptr.vmem [resolvable:$true] %s403_s9 }
  0x4d   :  { %v102_v7 = vld [vmem:[#allocation9 + $0x68] sm:$0xff]  ;;  %v101_v11 = vld [vmem:[#allocation9 + $0x60] sm:$0xff]  ;;  %v112_v19 = vld [vmem:[#allocation10 + $0x38] sm:$0xff]  ;;  %s543_s0 = scalar_lea.vmem %s404_s9, 640  ;;  %p548_p5 = scmp.lt.s32.totalorder %s404_s9, %s404_s9 }
  0x4e   :  { %v421_v9 = vpack.c.bf16 %v102_v7, %v98_v6  ;;  %418 = vmatprep.subr.bf16.mxu0 %v417_v4  ;;  %v106_v12 = vld [vmem:[#allocation10 + $0x8] sm:$0xff]  ;;  %v423_v14 = vpack.c.bf16 %v101_v11, %v97_v10  ;;  %v105_v15 = vld [vmem:[#allocation10] sm:$0xff]  ;;  %v92_v20 = vld [vmem:[#allocation9 + $0x18] sm:$0xff]  ;;  %v370_v41 = vsub.s32 2, %v361_v40  ;;  %v374_v42 = vsub.s32 3, %v361_v40  ;;  %p544_p4 = scmp.ne.s32.totalorder %s404_s9, %s543_s0  ;;  %p549_p6 = scmp.lt.s32.totalorder %s543_s0, %s543_s0 }
  0x4f   :  { %420 = vmatpush1.bf16.msra.mxu0 %v419_v8  ;;  %v433_v16 = vpack.c.bf16 %v108_v13, %v106_v12  ;;  %v110_v18 = vld [vmem:[#allocation10 + $0x28] sm:$0xff]  ;;  %v96_v21 = vld [vmem:[#allocation9 + $0x38] sm:$0xff]  ;;  %v91_v22 = vld [vmem:[#allocation9 + $0x10] sm:$0xff]  ;;  %v435_v28 = vpack.c.bf16 %v107_v17, %v105_v15  ;;  %v362_v43 = vsub.s32 0, %v361_v40  ;;  %v366_v45 = vsub.s32 1, %v361_v40 }
  0x50   :  { %422 = vmatprep.subr.bf16.mxu0 %v421_v9  ;;  %v425_v23 = vpack.c.bf16 %v96_v21, %v92_v20  ;;  %v95_v24 = vld [vmem:[#allocation9 + $0x30] sm:$0xff]  ;;  %v100_v25 = vld [vmem:[#allocation9 + $0x58] sm:$0xff]  ;;  %v437_v33 = vpack.c.bf16 %v112_v19, %v110_v18  ;;  %v109_v34 = vld [vmem:[#allocation10 + $0x20] sm:$0xff]  ;;  %p550_p7 = por %p549_p6, %p548_p5 }
  0x51   :  { %v104_v26 = vld [vmem:[#allocation9 + $0x78] sm:$0xff]  ;;  %v87_v27 = vld [vmem:[#allocation4] sm:$0xff]  ;;  %v427_v29 = vpack.c.bf16 %v95_v24, %v91_v22 }
  0x52   :  { %v429_v30 = vpack.c.bf16 %v104_v26, %v100_v25  ;;  %v99_v31 = vld [vmem:[#allocation9 + $0x50] sm:$0xff]  ;;  %426 = vmatprep.subr.bf16.mxu1 %v425_v23  ;;  %v88_v38 = vld [vmem:[#allocation7] sm:$0xff]  ;;  %p551_p8 = pnand %p550_p7, %p544_p4 }
  0x53   :  { %424 = vmatpush1.bf16.msra.mxu0 %v423_v14  ;;  %v103_v32 = vld [vmem:[#allocation9 + $0x70] sm:$0xff]  ;;  %428 = vmatpush1.bf16.msra.mxu1 %v427_v29 }
  0x54   :  { %434 = vmatprep.subr.bf16.mxu0 %v433_v16  ;;  %v111_v35 = vld [vmem:[#allocation10 + $0x30] sm:$0xff]  ;;  %v431_v36 = vpack.c.bf16 %v103_v32, %v99_v31  ;;  %430 = vmatprep.subr.bf16.mxu1 %v429_v30 }
  0x55   :  { %v439_v37 = vpack.c.bf16 %v111_v35, %v109_v34  ;;  %v358_v44 = vld [vmem:[%s701_s6] sm:$0xf] }
  0x56   :  { %414 = vmatmul.mubr.msk.f32.vlgmr.msra.gmra.mrb[0].mxu0 %vm117_vm0, %v87_v27  ;;  %v371_v46 = vrot.slane %v358_v44, %v370_v41  ;;  %v375_v47 = vrot.slane %v358_v44, %v374_v42  ;;  %v363_v48 = vrot.slane %v358_v44, %v362_v43  ;;  %v367_v49 = vrot.slane %v358_v44, %v366_v45  ;;  %v385_v61 = vld [vmem:[%s698_s3] sm:$0xff] }
  0x57   :  { %436 = vmatpush1.bf16.msra.mxu0 %v435_v28  ;;  %340 = vmatprep.mubr.f32.mxu0 %v581_v0 }
  0x58   :  { %438 = vmatprep.subr.bf16.mxu0 %v437_v33  ;;  %432 = vmatpush1.bf16.msra.mxu1 %v431_v36 }
  0x5b   :  { %440 = vmatpush1.bf16.msra.mxu0 %v439_v37  ;;  %415 = vmatmul.mubr.msk.f32.vlgmr.msra.gmra.mrb[0].mxu1 %vm117_vm0, %v87_v27 }
  0x5e   :  { %416 = vmatmul.mubr.msk.f32.vlgmr.msra.gmra.mrb[0].mxu0 %vm117_vm0, %v88_v38 }
 0x12e   :  { %v258_v50 = vpop.f32.mrb[0].mxu1 }
 0x12f   :  { %v382_v51 = vadd.f32 %v371_v46, %v258_v50  ;;  %v260_v52 = vpop.f32.mrb[1].mxu1 }
 0x130   :  { %v383_v54 = vadd.f32 %v375_v47, %v260_v52 }
 0x131   :  { %v342_v53 = vpop.f32.mrb[0].mxu0  ;;  %394 = vst [vmem:[#allocation12 + $0x10] sm:$0xff] %v382_v51 }
 0x132   :  { %v380_v55 = vadd.f32 %v363_v48, %v342_v53  ;;  %v344_v56 = vpop.f32.mrb[1].mxu0  ;;  %395 = vst [vmem:[#allocation12 + $0x18] sm:$0xff] %v383_v54 }
 0x133   :  { %v381_v58 = vadd.f32 %v367_v49, %v344_v56 }
 0x134   :  { %392 = vst [vmem:[#allocation12] sm:$0xff] %v380_v55 }
 0x135   :  { %v387_v59 = vmul.f32 %v386_v57, %v381_v58  ;;  %393 = vst [vmem:[#allocation12 + $0x8] sm:$0xff] %v381_v58 }
 0x137   :  { %v388_v60 = vmul.f32 1.442695, %v387_v59 }
 0x139   :  { %453 = vpow2.f32 %v388_v60 }
 0x143   :  { %v454_v62 = vpop.eup %453 }
 0x144   :  { %v390_v63 = vmul.f32 %v454_v62, %v385_v61 }
 0x146   :  { %v391_v0 = vadd.f32 %v390_v63, %v380_v55 }
 0x148   :  { %396 = vst [vmem:[#allocation12 + $0x20] sm:$0xff] %v391_v0 }
 0x149   :  { %554 = shalt.err (!%p551_p8)
}
 0x14a   :  { %s555_s1 = scalar_lea.hbm %s702_s7, 640 }
 0x14b   :  { %p556_p9 = scmp.ne.s32.totalorder %s702_s7, %s555_s1  ;;  %p559_p10 = scmp.lt.u32.totalorder %s555_s1, %s702_s7 }
 0x14d   :  { %p561_p11 = pnand %p559_p10, %p556_p9 }
 0x14f   :  { %564 = shalt.err (!%p561_p11)
}
 0x150   :  { %406 = dma.vmem_to_hbm [thread:$0]  %s404_s9, 640, %s702_s7, [#allocation6]  }
 0x151   :  { %571 = dma.done.wait [#allocation6], 640  }
 0x152   :  { %572 = vsyncadd [#allocation6], 4294966656 }
 0x153   :  { %410 = vsyncpa [#allocation5], 1 }
 0x154   :  { %411 = vsyncpa [#allocation8], 1 }
 0x155   :  { %412 = vsyncpa [#allocation11], 1 }
 0x156   :  { %413 = vsyncpa [#allocation6], 1 }

</bundles_post_ra>
